<compile_context>
chip_gen: v5e
topology: v5e:2x2
jax: 0.10.0
libtpu: 0.0.40
codegen_flags: <defaults>
</compile_context>

<pallas_src>
import functools

import jax
import jax.numpy as jnp
from jax.experimental import pallas as pl
from jax.experimental.pallas import tpu as pltpu

LANE = 128
SUBLANE = 8


def _round_up(n, m):
    return ((n + m - 1) // m) * m


def dqn_mlp_kernel(x_ref, w1_ref, b1_ref, w2_ref, b2_ref, w3_ref, b3_ref, out_ref):
    """One batch tile of the fused 3-layer MLP."""
    # Layer 1: MXU matmul (f32 accumulate), VPU bias + ReLU in f32.
    h1 = jnp.dot(x_ref[...], w1_ref[...], preferred_element_type=jnp.float32)
    h1 = jnp.maximum(h1 + b1_ref[...], 0.0)
    # Layer 2.
    h2 = jnp.dot(h1.astype(w2_ref.dtype), w2_ref[...], preferred_element_type=jnp.float32)
    h2 = jnp.maximum(h2 + b2_ref[...], 0.0)
    # Layer 3 (Q-values, no activation).  Output tile is lane-dense (128 cols).
    q = jnp.dot(h2.astype(w3_ref.dtype), w3_ref[...], preferred_element_type=jnp.float32)
    out_ref[...] = (q + b3_ref[...]).astype(out_ref.dtype)


def _pad_params(params, matmul_dtype):
    """Zero-pad hidden/action dims to 128 lanes; cast weights to the matmul dtype.

    Zero padding is numerically exact: padded hidden units are ReLU(0+0)=0 and the
    corresponding weight rows/cols are 0, so real outputs are unchanged.
    """
    w1, b1, w2, b2, w3, b3 = params
    _, hidden = w1.shape
    act = w3.shape[1]
    hp = _round_up(hidden, LANE)
    ap = _round_up(act, LANE)

    w1p = jnp.pad(w1, ((0, 0), (0, hp - hidden))).astype(matmul_dtype)
    b1p = jnp.pad(b1, ((0, 0), (0, hp - hidden))).astype(jnp.float32)
    w2p = jnp.pad(w2, ((0, hp - hidden), (0, hp - hidden))).astype(matmul_dtype)
    b2p = jnp.pad(b2, ((0, 0), (0, hp - hidden))).astype(jnp.float32)
    w3p = jnp.pad(w3, ((0, hp - hidden), (0, ap - act))).astype(matmul_dtype)
    b3p = jnp.pad(b3, ((0, 0), (0, ap - act))).astype(jnp.float32)
    return (w1p, b1p, w2p, b2p, w3p, b3p), hp, ap


@functools.partial(jax.jit, static_argnames=("matmul_dtype", "tile_b"))
def dqn_forward(x, params, *, matmul_dtype=jnp.bfloat16, tile_b=512):
    """Forward pass of DQN.  x: (batch, observation_space) float32 -> (batch, A) f32."""
    batch, obs = x.shape
    w3 = params[4]
    act = w3.shape[1]

    (w1p, b1p, w2p, b2p, w3p, b3p), hp, ap = _pad_params(params, matmul_dtype)

    # Batch tiling: pad rows to a sublane-friendly multiple of the tile so Pallas
    # pipelines x / out tiles (prefetch i+1 while computing i) while the weights
    # stay resident in VMEM across the whole grid.
    tb = min(tile_b, _round_up(batch, SUBLANE))
    bp = _round_up(batch, tb)
    xp = jnp.pad(x, ((0, bp - batch), (0, 0))).astype(matmul_dtype)

    grid = (bp // tb,)
    bpe = jnp.dtype(matmul_dtype).itemsize
    cost = pl.CostEstimate(
        flops=2 * bp * (obs * hp + hp * hp + hp * ap),
        transcendentals=0,
        bytes_accessed=(bp * obs * bpe                      # x in
                        + bp * ap * 4                       # out
                        + (obs * hp + hp * hp + hp * ap) * bpe  # weights
                        + 3 * hp * 4),                      # biases (upper bound)
    )

    out_padded = pl.pallas_call(
        dqn_mlp_kernel,
        out_shape=jax.ShapeDtypeStruct((bp, ap), jnp.float32),
        grid=grid,
        in_specs=[
            pl.BlockSpec((tb, obs), lambda i: (i, 0)),   # x: tiled over batch
            pl.BlockSpec((obs, hp), lambda i: (0, 0)),   # weights/biases: VMEM-resident
            pl.BlockSpec((1, hp), lambda i: (0, 0)),
            pl.BlockSpec((hp, hp), lambda i: (0, 0)),
            pl.BlockSpec((1, hp), lambda i: (0, 0)),
            pl.BlockSpec((hp, ap), lambda i: (0, 0)),
            pl.BlockSpec((1, ap), lambda i: (0, 0)),
        ],
        out_specs=pl.BlockSpec((tb, ap), lambda i: (i, 0)),
        compiler_params=pltpu.CompilerParams(
            dimension_semantics=("parallel",),           # shards batch grid over v7x's 2 TCs
        ),
        cost_estimate=cost,
    )(xp, w1p, b1p, w2p, b2p, w3p, b3p)

    # Strip batch padding and lane padding (store is lane-dense inside the kernel).
    return out_padded[:batch, :act]


def init_dqn_params(key, observation_space, action_space, neurons_per_layer=48):
    """Deterministic synthetic parameters (same shapes as the PyTorch module)."""
    ks = jax.random.split(key, 6)
    scale1 = 1.0 / jnp.sqrt(observation_space)
    scale2 = 1.0 / jnp.sqrt(neurons_per_layer)
    # weights stored as (in, out) == PyTorch weight.T
    w1 = jax.random.uniform(ks[0], (observation_space, neurons_per_layer),
                            jnp.float32, -scale1, scale1)
    b1 = jax.random.uniform(ks[1], (1, neurons_per_layer), jnp.float32, -scale1, scale1)
    w2 = jax.random.uniform(ks[2], (neurons_per_layer, neurons_per_layer),
                            jnp.float32, -scale2, scale2)
    b2 = jax.random.uniform(ks[3], (1, neurons_per_layer), jnp.float32, -scale2, scale2)
    w3 = jax.random.uniform(ks[4], (neurons_per_layer, action_space),
                            jnp.float32, -scale2, scale2)
    b3 = jax.random.uniform(ks[5], (1, action_space), jnp.float32, -scale2, scale2)
    return (w1, b1, w2, b2, w3, b3)


if __name__ == "__main__":
    # TODO(synk): DQN.act()'s epsilon-greedy exploration (host-side RNG + argmax policy)
    # is host control flow, not part of forward(); only the network forward is kernelized.
    observation_space = 16
    action_space = 4
    neurons_per_layer = 48
    batch = 2

    key = jax.random.PRNGKey(0)
    k_x, k_p = jax.random.split(key)
    x = jax.random.normal(k_x, (batch, observation_space), dtype=jnp.float32)
    params = init_dqn_params(k_p, observation_space, action_space, neurons_per_layer)
    w1, b1, w2, b2, w3, b3 = params

    # Pure-JAX f32 reference (exact PyTorch forward semantics).
    ref32 = jnp.maximum(x @ w1 + b1, 0.0)
    ref32 = jnp.maximum(ref32 @ w2 + b2, 0.0)
    ref32 = ref32 @ w3 + b3

    # 1) Exact-semantics path (f32 matmul inputs).
    q_f32 = dqn_forward(x, params, matmul_dtype=jnp.float32)
    jax.block_until_ready(q_f32)
    assert q_f32.shape == (batch, action_space)
    assert jnp.allclose(q_f32, ref32, atol=1e-5, rtol=1e-5)

    # 2) Default fast path (bf16 matmul inputs, f32 accumulate).
    q_bf16 = dqn_forward(x, params)
    jax.block_until_ready(q_bf16)
    assert q_bf16.shape == (batch, action_space)

    bf = jnp.bfloat16
    r = jnp.dot(x.astype(bf), w1.astype(bf), preferred_element_type=jnp.float32) + b1
    r = jnp.maximum(r, 0.0)
    r = jnp.dot(r.astype(bf), w2.astype(bf), preferred_element_type=jnp.float32) + b2
    r = jnp.maximum(r, 0.0)
    ref_bf = jnp.dot(r.astype(bf), w3.astype(bf), preferred_element_type=jnp.float32) + b3
    assert jnp.allclose(q_bf16, ref_bf, atol=1e-3, rtol=1e-3)   # matches bf16-input math
    assert jnp.allclose(q_bf16, ref32, atol=5e-2, rtol=5e-2)    # close to f32 semantics

    # 3) Larger batch exercises the pipelined grid (multiple tiles) on the same code path.
    k_big = jax.random.PRNGKey(1)
    x_big = jax.random.normal(k_big, (1024 + 37, observation_space), dtype=jnp.float32)
    q_big = dqn_forward(x_big, params, matmul_dtype=jnp.float32)
    jax.block_until_ready(q_big)
    ref_big = jnp.maximum(x_big @ w1 + b1, 0.0)
    ref_big = jnp.maximum(ref_big @ w2 + b2, 0.0)
    ref_big = ref_big @ w3 + b3
    assert q_big.shape == (x_big.shape[0], action_space)
    assert jnp.allclose(q_big, ref_big, atol=1e-4, rtol=1e-4)

    print("KERNEL_OK")
</pallas_src>

<mosaic_0001>
module attributes {stable_mosaic.version = 11 : i64} {
  func.func @dqn_mlp_kernel(%arg0: i32, %arg1: memref<8x16xf32, #tpu.memory_space<vmem>>, %arg2: memref<16x128xf32, #tpu.memory_space<vmem>>, %arg3: memref<1x128xf32, #tpu.memory_space<vmem>>, %arg4: memref<128x128xf32, #tpu.memory_space<vmem>>, %arg5: memref<1x128xf32, #tpu.memory_space<vmem>>, %arg6: memref<128x128xf32, #tpu.memory_space<vmem>>, %arg7: memref<1x128xf32, #tpu.memory_space<vmem>>, %arg8: memref<8x128xf32, #tpu.memory_space<vmem>>) attributes {dimension_semantics = [#tpu.dimension_semantics<parallel>], iteration_bounds = array<i64: 1>, scalar_prefetch = 0 : i64, scratch_operands = 0 : i64, tpu.core_type = #tpu.core_type<tc>, window_params = [{transform_indices = @transform_0, window_bounds = array<i64: 8, 16>}, {pipeline_mode = #tpu.pipeline_mode<synchronous>, transform_indices = @transform_1, window_bounds = array<i64: 16, 128>}, {pipeline_mode = #tpu.pipeline_mode<synchronous>, transform_indices = @transform_2, window_bounds = array<i64: 1, 128>}, {pipeline_mode = #tpu.pipeline_mode<synchronous>, transform_indices = @transform_3, window_bounds = array<i64: 128, 128>}, {pipeline_mode = #tpu.pipeline_mode<synchronous>, transform_indices = @transform_4, window_bounds = array<i64: 1, 128>}, {pipeline_mode = #tpu.pipeline_mode<synchronous>, transform_indices = @transform_5, window_bounds = array<i64: 128, 128>}, {pipeline_mode = #tpu.pipeline_mode<synchronous>, transform_indices = @transform_6, window_bounds = array<i64: 1, 128>}, {transform_indices = @transform_7, window_bounds = array<i64: 8, 128>}]} {
    %c0 = arith.constant 0 : index
    %c0_0 = arith.constant 0 : index
    %0 = vector.load %arg1[%c0, %c0_0] : memref<8x16xf32, #tpu.memory_space<vmem>>, vector<8x16xf32>
    %c0_1 = arith.constant 0 : index
    %c0_2 = arith.constant 0 : index
    %1 = vector.load %arg2[%c0_1, %c0_2] : memref<16x128xf32, #tpu.memory_space<vmem>>, vector<16x128xf32>
    %cst = arith.constant dense<0.000000e+00> : vector<8x128xf32>
    %2 = tpu.matmul %0, %1, %cst {dimension_numbers = #tpu.dot_dimension_numbers<[1], [0], [0], [1], [0, 0, 1, 1], [], []>} : vector<8x16xf32>, vector<16x128xf32>, vector<8x128xf32> -> vector<8x128xf32>
    %c0_3 = arith.constant 0 : index
    %c0_4 = arith.constant 0 : index
    %3 = vector.load %arg3[%c0_3, %c0_4] : memref<1x128xf32, #tpu.memory_space<vmem>>, vector<1x128xf32>
    %4 = vector.broadcast %3 : vector<1x128xf32> to vector<8x128xf32>
    %5 = arith.addf %2, %4 : vector<8x128xf32>
    %cst_5 = arith.constant 0.000000e+00 : f32
    %6 = vector.broadcast %cst_5 : f32 to vector<8x128xf32>
    %7 = arith.maximumf %5, %6 : vector<8x128xf32>
    %c0_6 = arith.constant 0 : index
    %c0_7 = arith.constant 0 : index
    %8 = vector.load %arg4[%c0_6, %c0_7] : memref<128x128xf32, #tpu.memory_space<vmem>>, vector<128x128xf32>
    %cst_8 = arith.constant dense<0.000000e+00> : vector<8x128xf32>
    %9 = tpu.matmul %7, %8, %cst_8 {dimension_numbers = #tpu.dot_dimension_numbers<[1], [0], [0], [1], [0, 0, 1, 1], [], []>} : vector<8x128xf32>, vector<128x128xf32>, vector<8x128xf32> -> vector<8x128xf32>
    %c0_9 = arith.constant 0 : index
    %c0_10 = arith.constant 0 : index
    %10 = vector.load %arg5[%c0_9, %c0_10] : memref<1x128xf32, #tpu.memory_space<vmem>>, vector<1x128xf32>
    %11 = vector.broadcast %10 : vector<1x128xf32> to vector<8x128xf32>
    %12 = arith.addf %9, %11 : vector<8x128xf32>
    %cst_11 = arith.constant 0.000000e+00 : f32
    %13 = vector.broadcast %cst_11 : f32 to vector<8x128xf32>
    %14 = arith.maximumf %12, %13 : vector<8x128xf32>
    %c0_12 = arith.constant 0 : index
    %c0_13 = arith.constant 0 : index
    %15 = vector.load %arg6[%c0_12, %c0_13] : memref<128x128xf32, #tpu.memory_space<vmem>>, vector<128x128xf32>
    %cst_14 = arith.constant dense<0.000000e+00> : vector<8x128xf32>
    %16 = tpu.matmul %14, %15, %cst_14 {dimension_numbers = #tpu.dot_dimension_numbers<[1], [0], [0], [1], [0, 0, 1, 1], [], []>} : vector<8x128xf32>, vector<128x128xf32>, vector<8x128xf32> -> vector<8x128xf32>
    %c0_15 = arith.constant 0 : index
    %c0_16 = arith.constant 0 : index
    %17 = vector.load %arg7[%c0_15, %c0_16] : memref<1x128xf32, #tpu.memory_space<vmem>>, vector<1x128xf32>
    %18 = vector.broadcast %17 : vector<1x128xf32> to vector<8x128xf32>
    %19 = arith.addf %16, %18 : vector<8x128xf32>
    %c0_17 = arith.constant 0 : index
    %c0_18 = arith.constant 0 : index
    %20 = vector.load %arg8[%c0_17, %c0_18] : memref<8x128xf32, #tpu.memory_space<vmem>>, vector<8x128xf32>
    tpu.vector_store %arg8[%c0_17, %c0_18], %19 {strides = array<i32>} : memref<8x128xf32, #tpu.memory_space<vmem>>, vector<8x128xf32>,
    return
  }
  func.func @transform_0(%arg0: i32) -> (i32, i32) {
    %c0_i32 = arith.constant 0 : i32
    %c0_i32_0 = arith.constant 0 : i32
    return %arg0, %c0_i32 : i32, i32
  }
  func.func @transform_1(%arg0: i32) -> (i32, i32) {
    %c0_i32 = arith.constant 0 : i32
    %c0_i32_0 = arith.constant 0 : i32
    %c0_i32_1 = arith.constant 0 : i32
    return %c0_i32, %c0_i32_0 : i32, i32
  }
  func.func @transform_2(%arg0: i32) -> (i32, i32) {
    %c0_i32 = arith.constant 0 : i32
    %c0_i32_0 = arith.constant 0 : i32
    %c0_i32_1 = arith.constant 0 : i32
    return %c0_i32, %c0_i32_0 : i32, i32
  }
  func.func @transform_3(%arg0: i32) -> (i32, i32) {
    %c0_i32 = arith.constant 0 : i32
    %c0_i32_0 = arith.constant 0 : i32
    %c0_i32_1 = arith.constant 0 : i32
    return %c0_i32, %c0_i32_0 : i32, i32
  }
  func.func @transform_4(%arg0: i32) -> (i32, i32) {
    %c0_i32 = arith.constant 0 : i32
    %c0_i32_0 = arith.constant 0 : i32
    %c0_i32_1 = arith.constant 0 : i32
    return %c0_i32, %c0_i32_0 : i32, i32
  }
  func.func @transform_5(%arg0: i32) -> (i32, i32) {
    %c0_i32 = arith.constant 0 : i32
    %c0_i32_0 = arith.constant 0 : i32
    %c0_i32_1 = arith.constant 0 : i32
    return %c0_i32, %c0_i32_0 : i32, i32
  }
  func.func @transform_6(%arg0: i32) -> (i32, i32) {
    %c0_i32 = arith.constant 0 : i32
    %c0_i32_0 = arith.constant 0 : i32
    %c0_i32_1 = arith.constant 0 : i32
    return %c0_i32, %c0_i32_0 : i32, i32
  }
  func.func @transform_7(%arg0: i32) -> (i32, i32) {
    %c0_i32 = arith.constant 0 : i32
    %c0_i32_0 = arith.constant 0 : i32
    return %arg0, %c0_i32 : i32, i32
  }
}

</mosaic_0001>

<bundles_post_ra>
// kernel: dqn_forward.1
= control target key start
LH: loop header
LB: loop body
LE: loop exit
PB: predicated region body
PF: predicated region fallthrough
CT: control target
= control target key end

     0   :  { %vm33_vm0 = vcmask 130048   ;;  %s305_s1 = inlined_call_operand.vmem [shape: f32[16,128], index: 1, kind: input, shape index: {}]   ;;  %s306_s0 = inlined_call_operand.vmem [shape: f32[8,16], index: 0, kind: input, shape index: {}]   ;;  %s307_s3 = inlined_call_operand.vmem [shape: f32[128,128], index: 3, kind: input, shape index: {}]   ;;  %s308_s2 = inlined_call_operand.vmem [shape: f32[1,128], index: 2, kind: input, shape index: {}]   ;;  %s309_s4 = inlined_call_operand.vmem [shape: f32[1,128], index: 4, kind: input, shape index: {}]   ;;  %s310_s5 = inlined_call_operand.vmem [shape: f32[128,128], index: 5, kind: input, shape index: {}]   ;;  %s311_s6 = inlined_call_operand.vmem [shape: f32[1,128], index: 6, kind: input, shape index: {}]   ;;  %s312_s7 = inlined_call_operand.vmem [shape: f32[8,128], index: 7, kind: output, shape index: {}]  }
   0x1   :  { %v28_v0 = vld [vmem:[%s305_s1 + $0x8] sm:$0xff]  ;;  %v27_v1 = vld [vmem:[%s305_s1] sm:$0xff]  ;;  %v73_v3 = vld [vmem:[%s307_s3 + $0x78] sm:$0xff] }
   0x2   :  { %51 = vmatpush.msra.mxu0 %v28_v0  ;;  %v26_v2 = vld [vmem:[%s306_s0] sm:$0xff]  ;;  %v72_v4 = vld [vmem:[%s307_s3 + $0x70] sm:$0xff]  ;;  %78 = vmatpush.msra.mxu1 %v73_v3  ;;  %v71_v5 = vld [vmem:[%s307_s3 + $0x68] sm:$0xff] }
   0x3   :  { %v70_v6 = vld [vmem:[%s307_s3 + $0x60] sm:$0xff]  ;;  %v69_v7 = vld [vmem:[%s307_s3 + $0x58] sm:$0xff]  ;;  %v68_v8 = vld [vmem:[%s307_s3 + $0x50] sm:$0xff] }
   0x4   :  { %52 = vmatpush.msra.mxu0 %v27_v1  ;;  %79 = vmatpush.msra.mxu1 %v72_v4  ;;  %v67_v9 = vld [vmem:[%s307_s3 + $0x48] sm:$0xff]  ;;  %v66_v10 = vld [vmem:[%s307_s3 + $0x40] sm:$0xff]  ;;  %v65_v11 = vld [vmem:[%s307_s3 + $0x38] sm:$0xff] }
   0x5   :  { %144 = vmatmul.msk.f32.vlgmr.msra.gmra.mxu0 %vm33_vm0, %v26_v2  ;;  %v64_v12 = vld [vmem:[%s307_s3 + $0x30] sm:$0xff]  ;;  %v63_v13 = vld [vmem:[%s307_s3 + $0x28] sm:$0xff]  ;;  %v62_v14 = vld [vmem:[%s307_s3 + $0x20] sm:$0xff] }
   0x6   :  { %80 = vmatpush.msra.mxu1 %v71_v5  ;;  %v61_v15 = vld [vmem:[%s307_s3 + $0x18] sm:$0xff]  ;;  %v60_v16 = vld [vmem:[%s307_s3 + $0x10] sm:$0xff]  ;;  %v59_v17 = vld [vmem:[%s307_s3 + $0x8] sm:$0xff] }
   0x7   :  { %v58_v18 = vld [vmem:[%s307_s3] sm:$0xff]  ;;  %v114_v19 = vld [vmem:[%s310_s5 + $0x78] sm:$0xff]  ;;  %v113_v20 = vld [vmem:[%s310_s5 + $0x70] sm:$0xff] }
   0x8   :  { %81 = vmatpush.msra.mxu1 %v70_v6  ;;  %119 = vmatpush.msra.mxu2 %v114_v19  ;;  %v112_v21 = vld [vmem:[%s310_s5 + $0x68] sm:$0xff]  ;;  %v111_v22 = vld [vmem:[%s310_s5 + $0x60] sm:$0xff]  ;;  %v110_v23 = vld [vmem:[%s310_s5 + $0x58] sm:$0xff] }
   0x9   :  { %v109_v24 = vld [vmem:[%s310_s5 + $0x50] sm:$0xff]  ;;  %v108_v25 = vld [vmem:[%s310_s5 + $0x48] sm:$0xff]  ;;  %v107_v26 = vld [vmem:[%s310_s5 + $0x40] sm:$0xff] }
   0xa   :  { %82 = vmatpush.msra.mxu1 %v69_v7  ;;  %120 = vmatpush.msra.mxu2 %v113_v20  ;;  %v106_v27 = vld [vmem:[%s310_s5 + $0x38] sm:$0xff]  ;;  %v105_v28 = vld [vmem:[%s310_s5 + $0x30] sm:$0xff]  ;;  %v104_v29 = vld [vmem:[%s310_s5 + $0x28] sm:$0xff] }
   0xb   :  { %v103_v30 = vld [vmem:[%s310_s5 + $0x20] sm:$0xff]  ;;  %v102_v31 = vld [vmem:[%s310_s5 + $0x18] sm:$0xff]  ;;  %v101_v36 = vld [vmem:[%s310_s5 + $0x10] sm:$0xff] }
   0xc   :  { %83 = vmatpush.msra.mxu1 %v68_v8  ;;  %121 = vmatpush.msra.mxu2 %v112_v21  ;;  %v145_v32 = vld [vmem:[%s308_s2] ss:$0 sm:$0xff]  ;;  %v100_v37 = vld [vmem:[%s310_s5 + $0x8] sm:$0xff] }
   0xd   :  { %v99_v38 = vld [vmem:[%s310_s5] sm:$0xff] }
   0xe   :  { %84 = vmatpush.msra.mxu1 %v67_v9  ;;  %122 = vmatpush.msra.mxu2 %v111_v22  ;;  %v146_v39 = vld [vmem:[%s309_s4] ss:$0 sm:$0xff] }
   0xf   :  { %v147_v43 = vld [vmem:[%s311_s6] ss:$0 sm:$0xff] }
  0x10   :  { %85 = vmatpush.msra.mxu1 %v66_v10  ;;  %123 = vmatpush.msra.mxu2 %v110_v23 }
  0x12   :  { %86 = vmatpush.msra.mxu1 %v65_v11  ;;  %124 = vmatpush.msra.mxu2 %v109_v24 }
  0x14   :  { %87 = vmatpush.msra.mxu1 %v64_v12  ;;  %125 = vmatpush.msra.mxu2 %v108_v25 }
  0x16   :  { %88 = vmatpush.msra.mxu1 %v63_v13  ;;  %126 = vmatpush.msra.mxu2 %v107_v26 }
  0x18   :  { %89 = vmatpush.msra.mxu1 %v62_v14  ;;  %127 = vmatpush.msra.mxu2 %v106_v27 }
  0x1a   :  { %90 = vmatpush.msra.mxu1 %v61_v15  ;;  %128 = vmatpush.msra.mxu2 %v105_v28 }
  0x1c   :  { %91 = vmatpush.msra.mxu1 %v60_v16  ;;  %129 = vmatpush.msra.mxu2 %v104_v29 }
  0x1e   :  { %92 = vmatpush.msra.mxu1 %v59_v17  ;;  %130 = vmatpush.msra.mxu2 %v103_v30 }
  0x20   :  { %93 = vmatpush.msra.mxu1 %v58_v18  ;;  %131 = vmatpush.msra.mxu2 %v102_v31 }
  0x22   :  { %132 = vmatpush.msra.mxu2 %v101_v36 }
  0x24   :  { %133 = vmatpush.msra.mxu2 %v100_v37 }
  0x26   :  { %134 = vmatpush.msra.mxu2 %v99_v38 }
  0x82   :  { %v54_v33 = vpop.f32.mrf.mxu0 }
  0x83   :  { %v55_v34 = vadd.f32 %v145_v32, %v54_v33 }
  0x85   :  { %v57_v35 = vmax.f32 %v55_v34, 0.0 }
  0x87   :  { %94 = vmatmul.f32.vlgmr.msra.gmra.mxu1 %v57_v35 }
 0x104   :  { %v95_v40 = vpop.f32.mrf.mxu1 }
 0x105   :  { %v96_v41 = vadd.f32 %v146_v39, %v95_v40 }
 0x107   :  { %v98_v42 = vmax.f32 %v96_v41, 0.0 }
 0x109   :  { %135 = vmatmul.f32.vlgmr.msra.gmra.mxu2 %v98_v42 }
 0x18c   :  { %v136_v44 = vpop.f32.mrf.mxu2 }
 0x18d   :  { %v137_v45 = vadd.f32 %v147_v43, %v136_v44 }
 0x18f   :  { %139 = vst [vmem:[%s312_s7] sm:$0xff] %v137_v45 }

</bundles_post_ra>
